<compile_context>
chip_gen: v7x
topology: tpu7x:2x2x1
jax: 0.10.0
libtpu: 0.0.40
codegen_flags: <defaults>
</compile_context>

<pallas_src>
import functools

import jax
import jax.numpy as jnp
import numpy as np
from jax.experimental import pallas as pl
from jax.experimental.pallas import tpu as pltpu

# Static model dims from SimpleModel.__init__
CIN, COUT, KH, KW = 3, 16, 3, 3
FC_OUT = 10
N_PAD = 128  # lane-dense output width (>= FC_OUT, multiple of 128)


def _simple_model_kernel(x_ref, a_ref, b_ref, out_ref):
    # x_ref:   (tb, K)        flattened input block (lane-dense K axis)
    # a_ref:   (K, N_PAD)     folded conv+pool+fc weight, zero-padded lanes
    # b_ref:   (1, N_PAD)     folded bias, zero-padded lanes
    # out_ref: (tb, N_PAD)    lane-dense output block (unmasked stores)
    acc = jnp.dot(x_ref[...], a_ref[...], preferred_element_type=jnp.float32)
    out_ref[...] = (acc + b_ref[...]).astype(out_ref.dtype)


def _fold_params(conv_w, conv_b, fc_w, fc_b, H, W, dtype):
    """Fold conv(3x3, VALID) -> global-avg-pool -> Linear into one matrix/bias.

    Pure parameter transform (independent of x):
      A: (CIN*H*W, N_PAD)  (last N_PAD-FC_OUT lanes are zero)
      b: (1, N_PAD)
    """
    h_out, w_out = H - KH + 1, W - KW + 1
    conv_w = conv_w.astype(jnp.float32)
    fc_w = fc_w.astype(jnp.float32)

    # w_eff[ci,kh,kw,f] = sum_co conv_w[co,ci,kh,kw] * fc_w[f,co] / (h_out*w_out)
    w_eff = jnp.einsum("ocij,fo->cijf", conv_w, fc_w) / float(h_out * w_out)

    # Tap-support masks: tap (kh,kw) touches input row h iff kh <= h < kh+h_out
    hs = jnp.arange(H)[None, :]
    ws = jnp.arange(W)[None, :]
    khs = jnp.arange(KH)[:, None]
    kws = jnp.arange(KW)[:, None]
    mh = ((hs >= khs) & (hs < khs + h_out)).astype(jnp.float32)   # (KH, H)
    mw = ((ws >= kws) & (ws < kws + w_out)).astype(jnp.float32)   # (KW, W)

    # A[ci,h,w,f] = sum_{kh,kw} mh[kh,h] * mw[kw,w] * w_eff[ci,kh,kw,f]
    a = jnp.einsum("ih,jw,cijf->chwf", mh, mw, w_eff)
    a = a.reshape(CIN * H * W, FC_OUT)

    b_eff = (conv_b.astype(jnp.float32) @ fc_w.T
             + fc_b.astype(jnp.float32)).reshape(1, FC_OUT)

    # Zero-pad to 128 lanes so the kernel output is lane-dense.
    a = jnp.pad(a, ((0, 0), (0, N_PAD - FC_OUT))).astype(dtype)
    b_eff = jnp.pad(b_eff, ((0, 0), (0, N_PAD - FC_OUT)))
    return a, b_eff


def _vmem_capacity_bytes():
    """Trace-time VMEM capacity query with a conservative fallback (v7x: 64 MiB)."""
    try:
        return int(pltpu.get_tpu_info().vmem_capacity_bytes)
    except Exception:
        return 64 * 1024 * 1024


def simple_model_forward(x, conv_w, conv_b, fc_w, fc_b, *, compute_dtype=None):
    """x: (B, 3, H, W) NCHW (f32 or bf16).
    conv_w: (16, 3, 3, 3) torch OIHW, conv_b: (16,)
    fc_w:   (10, 16) torch layout,    fc_b:   (10,)
    Returns (B, 10) float32, matching SimpleModel.forward.

    compute_dtype defaults to x.dtype: no wrapper-side cast (an f32->bf16 cast
    would add an extra HBM pass over the dominant operand).  Pass bf16 only if
    x already lives in bf16 upstream."""
    B, cin, H, W = x.shape
    assert cin == CIN and H >= KH and W >= KW
    k = CIN * H * W

    if compute_dtype is None:
        compute_dtype = x.dtype
    compute_dtype = jnp.dtype(compute_dtype)
    itemsize = compute_dtype.itemsize

    # ---- fold parameters (weights only; cheap, fuses under jit) -----------
    a, b_eff = _fold_params(conv_w, conv_b, fc_w, fc_b, H, W, compute_dtype)

    # ---- flatten x lane-dense (contiguous reshape; cast only if needed) ---
    x_flat = x.reshape(B, k)
    if x_flat.dtype != compute_dtype:
        x_flat = x_flat.astype(compute_dtype)

    # ---- batch tiling ------------------------------------------------------
    # Budget for the double-buffered x blocks: a quarter of physical VMEM
    # (v5e/v6e: 32 MiB, v7x: 16 MiB) leaves ample room for A / bias / output
    # blocks and compiler scratch on every generation.
    capacity = _vmem_capacity_bytes()
    x_budget = capacity // 4
    row_bytes = k * itemsize
    row_align = 16 if itemsize == 2 else 8   # bf16 sublane packing

    if B <= 128:
        # Tiny batch: single grid step; per-step overhead would dominate.
        tb = B
        b_pad = B
    else:
        # Largest tile that fits the double-buffered budget ...
        max_tb = max(row_align, (x_budget // (2 * row_bytes)) // row_align * row_align)
        # ... but at least 2 grid steps so v7x's two TensorCores both work.
        half = -(-B // 2)
        half = -(-half // row_align) * row_align
        tb = min(max_tb, half)
        b_pad = -(-B // tb) * tb
        if b_pad > B:
            x_flat = jnp.pad(x_flat, ((0, b_pad - B), (0, 0)))

    grid = (b_pad // tb,)

    # Explicit VMEM limit: double-buffered x + weight + bias + output + slack.
    needed = (2 * tb * row_bytes
              + 2 * k * N_PAD * itemsize
              + 2 * N_PAD * 4
              + 2 * tb * N_PAD * 4)
    vmem_limit = int(min(capacity, max(needed + (4 << 20), 16 << 20)))

    out = pl.pallas_call(
        _simple_model_kernel,
        out_shape=jax.ShapeDtypeStruct((b_pad, N_PAD), jnp.float32),
        grid=grid,
        in_specs=[
            pl.BlockSpec((tb, k), lambda i: (i, 0)),        # x: tiled over batch
            pl.BlockSpec((k, N_PAD), lambda i: (0, 0)),     # folded weight (resident)
            pl.BlockSpec((1, N_PAD), lambda i: (0, 0)),     # folded bias (resident)
        ],
        out_specs=pl.BlockSpec((tb, N_PAD), lambda i: (i, 0)),
        compiler_params=pltpu.CompilerParams(
            dimension_semantics=("parallel",),
            vmem_limit_bytes=vmem_limit),
    )(x_flat, a, b_eff)

    # Drop batch padding and the zero-padded lanes.
    return out[:B, :FC_OUT]


def _reference_forward(x, conv_w, conv_b, fc_w, fc_b):
    """Pure-JAX reference mirroring the PyTorch forward exactly."""
    y = jax.lax.conv_general_dilated(
        x.astype(jnp.float32), conv_w, window_strides=(1, 1), padding="VALID",
        dimension_numbers=("NCHW", "OIHW", "NCHW"),
        precision=jax.lax.Precision.HIGHEST)
    y = y + conv_b.reshape(1, COUT, 1, 1)
    pooled = jnp.mean(y, axis=(2, 3))          # adaptive_avg_pool2d((1,1)) + flatten
    return pooled @ fc_w.T + fc_b


if __name__ == "__main__":
    key = jax.random.PRNGKey(0)
    kx, kcw, kcb, kfw, kfb = jax.random.split(key, 5)

    B, H, W = 2, 16, 16
    x = jax.random.normal(kx, (B, CIN, H, W), jnp.float32)

    # Deterministic synthetic parameters (shapes from SimpleModel.__init__).
    fan_in_conv = CIN * KH * KW
    conv_w = jax.random.normal(kcw, (COUT, CIN, KH, KW), jnp.float32) / np.sqrt(fan_in_conv)
    conv_b = 0.05 * jax.random.normal(kcb, (COUT,), jnp.float32)
    fc_w = jax.random.normal(kfw, (FC_OUT, COUT), jnp.float32) / np.sqrt(COUT)
    fc_b = 0.05 * jax.random.normal(kfb, (FC_OUT,), jnp.float32)

    # jit the full forward so the tiny parameter-fold einsums fuse/cache ahead
    # of the kernel (review item: steady-state latency for small B).
    fwd = jax.jit(simple_model_forward)

    out = fwd(x, conv_w, conv_b, fc_w, fc_b)
    out = jax.block_until_ready(out)
    assert out.shape == (B, FC_OUT)

    ref = _reference_forward(x, conv_w, conv_b, fc_w, fc_b)
    np.testing.assert_allclose(np.asarray(out), np.asarray(ref), rtol=1e-3, atol=1e-3)

    print("KERNEL_OK")
</pallas_src>

<mosaic_0001>
module attributes {stable_mosaic.version = 11 : i64} {
  func.func @_simple_model_kernel(%arg0: i32, %arg1: memref<2x768xf32, #tpu.memory_space<vmem>>, %arg2: memref<768x128xf32, #tpu.memory_space<vmem>>, %arg3: memref<1x128xf32, #tpu.memory_space<vmem>>, %arg4: memref<2x128xf32, #tpu.memory_space<vmem>>) attributes {dimension_semantics = [#tpu.dimension_semantics<parallel>], iteration_bounds = array<i64: 1>, scalar_prefetch = 0 : i64, scratch_operands = 0 : i64, tpu.core_type = #tpu.core_type<tc>, window_params = [{transform_indices = @transform_0, window_bounds = array<i64: 2, 768>}, {pipeline_mode = #tpu.pipeline_mode<synchronous>, transform_indices = @transform_1, window_bounds = array<i64: 768, 128>}, {pipeline_mode = #tpu.pipeline_mode<synchronous>, transform_indices = @transform_2, window_bounds = array<i64: 1, 128>}, {transform_indices = @transform_3, window_bounds = array<i64: 2, 128>}]} {
    %c0 = arith.constant 0 : index
    %c0_0 = arith.constant 0 : index
    %0 = vector.load %arg1[%c0, %c0_0] : memref<2x768xf32, #tpu.memory_space<vmem>>, vector<2x768xf32>
    %c0_1 = arith.constant 0 : index
    %c0_2 = arith.constant 0 : index
    %1 = vector.load %arg2[%c0_1, %c0_2] : memref<768x128xf32, #tpu.memory_space<vmem>>, vector<768x128xf32>
    %cst = arith.constant dense<0.000000e+00> : vector<2x128xf32>
    %2 = tpu.matmul %0, %1, %cst {dimension_numbers = #tpu.dot_dimension_numbers<[1], [0], [0], [1], [0, 0, 1, 1], [], []>} : vector<2x768xf32>, vector<768x128xf32>, vector<2x128xf32> -> vector<2x128xf32>
    %c0_3 = arith.constant 0 : index
    %c0_4 = arith.constant 0 : index
    %3 = vector.load %arg3[%c0_3, %c0_4] : memref<1x128xf32, #tpu.memory_space<vmem>>, vector<1x128xf32>
    %4 = vector.broadcast %3 : vector<1x128xf32> to vector<2x128xf32>
    %5 = arith.addf %2, %4 : vector<2x128xf32>
    %c0_5 = arith.constant 0 : index
    %c0_6 = arith.constant 0 : index
    %6 = vector.load %arg4[%c0_5, %c0_6] : memref<2x128xf32, #tpu.memory_space<vmem>>, vector<2x128xf32>
    tpu.vector_store %arg4[%c0_5, %c0_6], %5 {strides = array<i32>} : memref<2x128xf32, #tpu.memory_space<vmem>>, vector<2x128xf32>,
    return
  }
  func.func @transform_0(%arg0: i32) -> (i32, i32) {
    %c0_i32 = arith.constant 0 : i32
    %c0_i32_0 = arith.constant 0 : i32
    return %arg0, %c0_i32 : i32, i32
  }
  func.func @transform_1(%arg0: i32) -> (i32, i32) {
    %c0_i32 = arith.constant 0 : i32
    %c0_i32_0 = arith.constant 0 : i32
    %c0_i32_1 = arith.constant 0 : i32
    return %c0_i32, %c0_i32_0 : i32, i32
  }
  func.func @transform_2(%arg0: i32) -> (i32, i32) {
    %c0_i32 = arith.constant 0 : i32
    %c0_i32_0 = arith.constant 0 : i32
    %c0_i32_1 = arith.constant 0 : i32
    return %c0_i32, %c0_i32_0 : i32, i32
  }
  func.func @transform_3(%arg0: i32) -> (i32, i32) {
    %c0_i32 = arith.constant 0 : i32
    %c0_i32_0 = arith.constant 0 : i32
    return %arg0, %c0_i32 : i32, i32
  }
}

</mosaic_0001>

<bundles_post_ra>
// kernel: simple_model_forward.1
= control target key start
LH: loop header
LB: loop body
LE: loop exit
PB: predicated region body
PF: predicated region fallthrough
CT: control target
= control target key end

     0   :  { %v608_v43 = vmov 1983009808   ;;  %v126_v45 = vlaneseq  ;;  %s939_s0 = inlined_call_operand.vmem [shape: f32[2,768], index: 0, kind: input, shape index: {}]   ;;  %s940_s1 = inlined_call_operand.vmem [shape: f32[768,128], index: 1, kind: input, shape index: {}]   ;;  %s941_s2 = inlined_call_operand.vmem [shape: f32[1,128], index: 2, kind: input, shape index: {}]   ;;  %s942_s3 = inlined_call_operand.hbm [shape: f32[2,128], index: 3, kind: output, shape index: {}]  }
   0x1   :  { %v33_v0 = vld [vmem:[%s940_s1 + $0x80] sm:$0xff]  ;;  %v34_v1 = vld [vmem:[%s940_s1 + $0x88] sm:$0xff]  ;;  %v35_v11 = vld [vmem:[%s940_s1 + $0x90] sm:$0xff]  ;;  %v124_v44 = vunpack.c.l.s4 %v608_v43 }
   0x2   :  { %v17_v2 = vld [vmem:[%s940_s1] sm:$0xff]  ;;  %v485_v3 = vpack.c.bf16 %v34_v1, %v33_v0  ;;  %v18_v4 = vld [vmem:[%s940_s1 + $0x8] sm:$0xff]  ;;  %v36_v13 = vld [vmem:[%s940_s1 + $0x98] sm:$0xff]  ;;  %v127_v60 = vshrl.u32 %v126_v45, 7 }
   0x3   :  { %v65_v5 = vld [vmem:[%s940_s1 + $0x180] sm:$0xff]  ;;  %v66_v6 = vld [vmem:[%s940_s1 + $0x188] sm:$0xff]  ;;  %v487_v7 = vpack.c.bf16 %v18_v4, %v17_v2  ;;  %v19_v14 = vld [vmem:[%s940_s1 + $0x10] sm:$0xff]  ;;  %v489_v16 = vpack.c.bf16 %v36_v13, %v35_v11  ;;  %v125_v59 = vunpack.c.0.s8 %v124_v44 }
   0x4   :  { %v517_v8 = vpack.c.bf16 %v66_v6, %v65_v5  ;;  %v49_v9 = vld [vmem:[%s940_s1 + $0x100] sm:$0xff]  ;;  %v50_v10 = vld [vmem:[%s940_s1 + $0x108] sm:$0xff]  ;;  %486 = vmatprep.subr.bf16.mxu0 %v485_v3  ;;  %v20_v15 = vld [vmem:[%s940_s1 + $0x18] sm:$0xff] }
   0x5   :  { %v519_v12 = vpack.c.bf16 %v50_v10, %v49_v9  ;;  %488 = vmatpush3.bf16.msra.mxu0 %v487_v7  ;;  %v491_v17 = vpack.c.bf16 %v20_v15, %v19_v14  ;;  %v67_v18 = vld [vmem:[%s940_s1 + $0x190] sm:$0xff]  ;;  %v68_v19 = vld [vmem:[%s940_s1 + $0x198] sm:$0xff]  ;;  %v37_v23 = vld [vmem:[%s940_s1 + $0xa0] sm:$0xff]  ;;  %v128_v10 = vsub.s32 %v125_v59, %v127_v60 }
   0x6   :  { %518 = vmatprep.subr.bf16.mxu1 %v517_v8  ;;  %v51_v20 = vld [vmem:[%s940_s1 + $0x110] sm:$0xff]  ;;  %v521_v21 = vpack.c.bf16 %v68_v19, %v67_v18  ;;  %v52_v22 = vld [vmem:[%s940_s1 + $0x118] sm:$0xff]  ;;  %v38_v24 = vld [vmem:[%s940_s1 + $0xa8] sm:$0xff]  ;;  %490 = vmatprep.subr.bf16.mxu0 %v489_v16 }
   0x7   :  { %520 = vmatpush3.bf16.msra.mxu1 %v519_v12  ;;  %v523_v25 = vpack.c.bf16 %v52_v22, %v51_v20  ;;  %v493_v26 = vpack.c.bf16 %v38_v24, %v37_v23  ;;  %v21_v27 = vld [vmem:[%s940_s1 + $0x20] sm:$0xff]  ;;  %v22_v28 = vld [vmem:[%s940_s1 + $0x28] sm:$0xff]  ;;  %v39_v35 = vld [vmem:[%s940_s1 + $0xb0] sm:$0xff] }
   0x8   :  { %v69_v29 = vld [vmem:[%s940_s1 + $0x1a0] sm:$0xff]  ;;  %522 = vmatprep.subr.bf16.mxu1 %v521_v21  ;;  %v70_v30 = vld [vmem:[%s940_s1 + $0x1a8] sm:$0xff]  ;;  %v495_v33 = vpack.c.bf16 %v22_v28, %v21_v27  ;;  %v40_v36 = vld [vmem:[%s940_s1 + $0xb8] sm:$0xff] }
   0x9   :  { %v53_v31 = vld [vmem:[%s940_s1 + $0x120] sm:$0xff]  ;;  %v54_v32 = vld [vmem:[%s940_s1 + $0x128] sm:$0xff]  ;;  %492 = vmatpush3.bf16.msra.mxu0 %v491_v17  ;;  %v525_v34 = vpack.c.bf16 %v70_v30, %v69_v29  ;;  %v23_v37 = vld [vmem:[%s940_s1 + $0x30] sm:$0xff]  ;;  %v497_v39 = vpack.c.bf16 %v40_v36, %v39_v35 }
   0xa   :  { %494 = vmatprep.subr.bf16.mxu0 %v493_v26  ;;  %v527_v38 = vpack.c.bf16 %v54_v32, %v53_v31  ;;  %v24_v40 = vld [vmem:[%s940_s1 + $0x38] sm:$0xff]  ;;  %v71_v41 = vld [vmem:[%s940_s1 + $0x1b0] sm:$0xff]  ;;  %v41_v49 = vld [vmem:[%s940_s1 + $0xc0] sm:$0xff] }
   0xb   :  { %524 = vmatpush3.bf16.msra.mxu1 %v523_v25  ;;  %v72_v42 = vld [vmem:[%s940_s1 + $0x1b8] sm:$0xff]  ;;  %v55_v47 = vld [vmem:[%s940_s1 + $0x130] sm:$0xff]  ;;  %v42_v50 = vld [vmem:[%s940_s1 + $0xc8] sm:$0xff]  ;;  %v499_v51 = vpack.c.bf16 %v24_v40, %v23_v37 }
   0xc   :  { %526 = vmatprep.subr.bf16.mxu1 %v525_v34  ;;  %v529_v46 = vpack.c.bf16 %v72_v42, %v71_v41  ;;  %v56_v48 = vld [vmem:[%s940_s1 + $0x138] sm:$0xff]  ;;  %v73_v52 = vld [vmem:[%s940_s1 + $0x1c0] sm:$0xff]  ;;  %v74_v53 = vld [vmem:[%s940_s1 + $0x1c8] sm:$0xff]  ;;  %v501_v55 = vpack.c.bf16 %v42_v50, %v41_v49 }
   0xd   :  { %496 = vmatpush3.bf16.msra.mxu0 %v495_v33  ;;  %v531_v54 = vpack.c.bf16 %v56_v48, %v55_v47  ;;  %v25_v56 = vld [vmem:[%s940_s1 + $0x40] sm:$0xff]  ;;  %v26_v57 = vld [vmem:[%s940_s1 + $0x48] sm:$0xff]  ;;  %v533_v61 = vpack.c.bf16 %v74_v53, %v73_v52  ;;  %v43_v63 = vld [vmem:[%s940_s1 + $0xd0] sm:$0xff] }
   0xe   :  { %498 = vmatprep.subr.bf16.mxu0 %v497_v39  ;;  %v57_v58 = vld [vmem:[%s940_s1 + $0x140] sm:$0xff]  ;;  %v58_v62 = vld [vmem:[%s940_s1 + $0x148] sm:$0xff]  ;;  %v44_v0 = vld [vmem:[%s940_s1 + $0xd8] sm:$0xff]  ;;  %v503_v3 = vpack.c.bf16 %v26_v57, %v25_v56 }
   0xf   :  { %528 = vmatpush3.bf16.msra.mxu1 %v527_v38  ;;  %v75_v1 = vld [vmem:[%s940_s1 + $0x1d0] sm:$0xff]  ;;  %v76_v2 = vld [vmem:[%s940_s1 + $0x1d8] sm:$0xff]  ;;  %v535_v5 = vpack.c.bf16 %v58_v62, %v57_v58  ;;  %v505_v6 = vpack.c.bf16 %v44_v0, %v43_v63  ;;  %v45_v12 = vld [vmem:[%s940_s1 + $0xe0] sm:$0xff] }
  0x10   :  { %530 = vmatprep.subr.bf16.mxu1 %v529_v46  ;;  %v27_v4 = vld [vmem:[%s940_s1 + $0x50] sm:$0xff]  ;;  %v28_v7 = vld [vmem:[%s940_s1 + $0x58] sm:$0xff]  ;;  %v537_v11 = vpack.c.bf16 %v76_v2, %v75_v1  ;;  %v46_v13 = vld [vmem:[%s940_s1 + $0xe8] sm:$0xff] }
  0x11   :  { %500 = vmatpush3.bf16.msra.mxu0 %v499_v51  ;;  %v59_v8 = vld [vmem:[%s940_s1 + $0x150] sm:$0xff]  ;;  %v60_v9 = vld [vmem:[%s940_s1 + $0x158] sm:$0xff]  ;;  %v77_v14 = vld [vmem:[%s940_s1 + $0x1e0] sm:$0xff]  ;;  %v507_v16 = vpack.c.bf16 %v28_v7, %v27_v4  ;;  %v509_v19 = vpack.c.bf16 %v46_v13, %v45_v12 }
  0x12   :  { %502 = vmatprep.subr.bf16.mxu0 %v501_v55  ;;  %v78_v15 = vld [vmem:[%s940_s1 + $0x1e8] sm:$0xff]  ;;  %v539_v17 = vpack.c.bf16 %v60_v9, %v59_v8  ;;  %v15_v18 = vld [vmem:[%s939_s0] sm:$0xff]  ;;  %v47_v27 = vld [vmem:[%s940_s1 + $0xf0] sm:$0xff] }
  0x13   :  { %532 = vmatpush3.bf16.msra.mxu1 %v531_v54  ;;  %v29_v20 = vld [vmem:[%s940_s1 + $0x60] sm:$0xff]  ;;  %v30_v21 = vld [vmem:[%s940_s1 + $0x68] sm:$0xff]  ;;  %v129_v23 = vrot.slane %v15_v18, %v128_v10  ;;  %v122_v24 = vcombine.high %v15_v18, %v15_v18  ;;  %v541_v25 = vpack.c.bf16 %v78_v15, %v77_v14  ;;  %v48_v28 = vld [vmem:[%s940_s1 + $0xf8] sm:$0xff] }
  0x14   :  { %534 = vmatprep.subr.bf16.mxu1 %v533_v61  ;;  %v61_v22 = vld [vmem:[%s940_s1 + $0x160] sm:$0xff]  ;;  %v62_v26 = vld [vmem:[%s940_s1 + $0x168] sm:$0xff]  ;;  %v79_v29 = vld [vmem:[%s940_s1 + $0x1f0] sm:$0xff]  ;;  %v511_v33 = vpack.c.bf16 %v30_v21, %v29_v20  ;;  %v513_v35 = vpack.c.bf16 %v48_v28, %v47_v27 }
  0x15   :  { %504 = vmatpush3.bf16.msra.mxu0 %v503_v3  ;;  %v80_v30 = vld [vmem:[%s940_s1 + $0x1f8] sm:$0xff]  ;;  %v137_v31 = vcombine.high %v129_v23, %v129_v23  ;;  %v136_v32 = vrot.slane %v122_v24, %v128_v10  ;;  %v543_v34 = vpack.c.bf16 %v62_v26, %v61_v22  ;;  %v31_v36 = vld [vmem:[%s940_s1 + $0x70] sm:$0xff]  ;;  %v97_v42 = vld [vmem:[%s940_s1 + $0x280] sm:$0xff] }
  0x16   :  { %506 = vmatprep.subr.bf16.mxu0 %v505_v6  ;;  %v32_v37 = vld [vmem:[%s940_s1 + $0x78] sm:$0xff]  ;;  %v63_v38 = vld [vmem:[%s940_s1 + $0x170] sm:$0xff]  ;;  %v545_v40 = vpack.c.bf16 %v80_v30, %v79_v29  ;;  %v98_v43 = vld [vmem:[%s940_s1 + $0x288] sm:$0xff] }
  0x17   :  { %536 = vmatpush3.bf16.msra.mxu1 %v535_v5  ;;  %v138_v39 = vcombine.high %v136_v32, %v136_v32  ;;  %217 = vmatprep.mubr.f32.mxu0 %v137_v31  ;;  %v64_v41 = vld [vmem:[%s940_s1 + $0x178] sm:$0xff]  ;;  %v515_v44 = vpack.c.bf16 %v32_v37, %v31_v36  ;;  %v549_v46 = vpack.c.bf16 %v98_v43, %v97_v42  ;;  %v81_v47 = vld [vmem:[%s940_s1 + $0x200] sm:$0xff]  ;;  %v82_v48 = vld [vmem:[%s940_s1 + $0x208] sm:$0xff] }
  0x18   :  { %538 = vmatprep.subr.bf16.mxu1 %v537_v11  ;;  %v547_v45 = vpack.c.bf16 %v64_v41, %v63_v38  ;;  %v99_v49 = vld [vmem:[%s940_s1 + $0x290] sm:$0xff]  ;;  %v100_v50 = vld [vmem:[%s940_s1 + $0x298] sm:$0xff]  ;;  %v551_v51 = vpack.c.bf16 %v82_v48, %v81_v47  ;;  %v379_v52 = vld.sshfl [vmem:[%s939_s0 + $0x8] sm:$0x33 pattern:$0x76325410] }
  0x19   :  { %508 = vmatpush3.bf16.msra.mxu0 %v507_v16  ;;  %287 = vmatprep.mubr.f32.mxu1 %v138_v39  ;;  %v553_v53 = vpack.c.bf16 %v100_v50, %v99_v49  ;;  %v83_v54 = vld [vmem:[%s940_s1 + $0x210] sm:$0xff]  ;;  %v84_v55 = vld [vmem:[%s940_s1 + $0x218] sm:$0xff]  ;;  %v146_v56 = vcombine.high %v379_v52, %v379_v52 }
  0x1a   :  { %510 = vmatprep.subr.bf16.mxu0 %v509_v19 }
  0x1b   :  { %540 = vmatpush3.bf16.msra.mxu1 %v539_v17 }
  0x1c   :  { %542 = vmatprep.subr.bf16.mxu1 %v541_v25 }
  0x1d   :  { %512 = vmatpush3.bf16.msra.mxu0 %v511_v33 }
  0x1e   :  { %514 = vmatprep.subr.bf16.mxu0 %v513_v35 }
  0x1f   :  { %544 = vmatpush3.bf16.msra.mxu1 %v543_v34 }
  0x20   :  { %546 = vmatprep.subr.bf16.mxu1 %v545_v40 }
  0x21   :  { %516 = vmatpush3.bf16.msra.mxu0 %v515_v44 }
  0x22   :  { %550 = vmatprep.subr.bf16.mxu0 %v549_v46 }
  0x23   :  { %548 = vmatpush3.bf16.msra.mxu1 %v547_v45 }
  0x24   :  { %8 = vsyncpa [#allocation3], 0  ;;  %v101_v57 = vld [vmem:[%s940_s1 + $0x2a0] sm:$0xff]  ;;  %v102_v58 = vld [vmem:[%s940_s1 + $0x2a8] sm:$0xff]  ;;  %218 = vmatmul.mubr.f32.vlgmr.msra.gmra.mrb[0].mxu0 %v129_v23  ;;  %v555_v59 = vpack.c.bf16 %v84_v55, %v83_v54 }
  0x25   :  { %552 = vmatpush3.bf16.msra.mxu0 %v551_v51  ;;  %v557_v60 = vpack.c.bf16 %v102_v58, %v101_v57  ;;  %v85_v61 = vld [vmem:[%s940_s1 + $0x220] sm:$0xff]  ;;  %v86_v62 = vld [vmem:[%s940_s1 + $0x228] sm:$0xff]  ;;  %357 = vmatprep.mubr.f32.mxu0 %v146_v56  ;;  %v103_v63 = vld [vmem:[%s940_s1 + $0x2b0] sm:$0xff] }
  0x26   :  { %288 = vmatmul.mubr.f32.vlgmr.msra.gmra.mrb[0].mxu1 %v136_v32  ;;  %554 = vmatprep.subr.bf16.mxu0 %v553_v53  ;;  %v104_v0 = vld [vmem:[%s940_s1 + $0x2b8] sm:$0xff]  ;;  %v559_v1 = vpack.c.bf16 %v86_v62, %v85_v61  ;;  %v87_v3 = vld [vmem:[%s940_s1 + $0x230] sm:$0xff]  ;;  %v105_v5 = vld [vmem:[%s940_s1 + $0x2c0] sm:$0xff] }
  0x27   :  { %v561_v2 = vpack.c.bf16 %v104_v0, %v103_v63  ;;  %v88_v4 = vld [vmem:[%s940_s1 + $0x238] sm:$0xff]  ;;  %v106_v6 = vld [vmem:[%s940_s1 + $0x2c8] sm:$0xff]  ;;  %v89_v9 = vld [vmem:[%s940_s1 + $0x240] sm:$0xff] }
  0x28   :  { %v563_v7 = vpack.c.bf16 %v88_v4, %v87_v3  ;;  %v565_v8 = vpack.c.bf16 %v106_v6, %v105_v5  ;;  %v90_v10 = vld [vmem:[%s940_s1 + $0x248] sm:$0xff]  ;;  %v107_v11 = vld [vmem:[%s940_s1 + $0x2d0] sm:$0xff]  ;;  %v108_v12 = vld [vmem:[%s940_s1 + $0x2d8] sm:$0xff] }
  0x29   :  { %556 = vmatpush3.bf16.msra.mxu0 %v555_v59  ;;  %v567_v13 = vpack.c.bf16 %v90_v10, %v89_v9  ;;  %v569_v14 = vpack.c.bf16 %v108_v12, %v107_v11  ;;  %v91_v15 = vld [vmem:[%s940_s1 + $0x250] sm:$0xff]  ;;  %v92_v16 = vld [vmem:[%s940_s1 + $0x258] sm:$0xff]  ;;  %v109_v17 = vld [vmem:[%s940_s1 + $0x2e0] sm:$0xff] }
  0x2a   :  { %558 = vmatprep.subr.bf16.mxu0 %v557_v60  ;;  %v110_v18 = vld [vmem:[%s940_s1 + $0x2e8] sm:$0xff]  ;;  %v571_v19 = vpack.c.bf16 %v92_v16, %v91_v15  ;;  %v93_v21 = vld [vmem:[%s940_s1 + $0x260] sm:$0xff]  ;;  %v111_v23 = vld [vmem:[%s940_s1 + $0x2f0] sm:$0xff] }
  0x2b   :  { %v573_v20 = vpack.c.bf16 %v110_v18, %v109_v17  ;;  %v94_v22 = vld [vmem:[%s940_s1 + $0x268] sm:$0xff]  ;;  %v112_v24 = vld [vmem:[%s940_s1 + $0x2f8] sm:$0xff]  ;;  %v95_v27 = vld [vmem:[%s940_s1 + $0x270] sm:$0xff] }
  0x2c   :  { %v575_v25 = vpack.c.bf16 %v94_v22, %v93_v21  ;;  %v577_v26 = vpack.c.bf16 %v112_v24, %v111_v23  ;;  %v96_v28 = vld [vmem:[%s940_s1 + $0x278] sm:$0xff]  ;;  %v378_v31 = vld [vmem:[%s941_s2] ss:$0 sm:$0xff]  ;;  %s609_s1 = smov [#allocation2]  }
  0x2d   :  { %560 = vmatpush3.bf16.msra.mxu0 %v559_v1  ;;  %v579_v29 = vpack.c.bf16 %v96_v28, %v95_v27  ;;  %s370_s19 = sshll.u32 %s609_s1, 4  ;;  %s371_s19 = int_to_ptr.vmem [resolvable:$true] %s370_s19 }
  0x2e   :  { %562 = vmatprep.subr.bf16.mxu0 %v561_v2  ;;  %s584_s20 = scalar_lea.vmem %s371_s19, 32  ;;  %p589_p1 = scmp.lt.s32.totalorder %s371_s19, %s371_s19 }
  0x2f   :  { %p585_p0 = scmp.ne.s32.totalorder %s371_s19, %s584_s20  ;;  %p590_p2 = scmp.lt.s32.totalorder %s584_s20, %s584_s20 }
  0x31   :  { %564 = vmatpush3.bf16.msra.mxu0 %v563_v7  ;;  %p591_p3 = por %p590_p2, %p589_p1 }
  0x32   :  { %566 = vmatprep.subr.bf16.mxu0 %v565_v8 }
  0x33   :  { %p592_p4 = pnand %p591_p3, %p585_p0 }
  0x35   :  { %568 = vmatpush3.bf16.msra.mxu0 %v567_v13 }
  0x36   :  { %570 = vmatprep.subr.bf16.mxu0 %v569_v14 }
  0x39   :  { %572 = vmatpush3.bf16.msra.mxu0 %v571_v19 }
  0x3a   :  { %574 = vmatprep.subr.bf16.mxu0 %v573_v20 }
  0x3d   :  { %576 = vmatpush3.bf16.msra.mxu0 %v575_v25 }
  0x3e   :  { %578 = vmatprep.subr.bf16.mxu0 %v577_v26 }
  0x41   :  { %580 = vmatpush3.bf16.msra.mxu0 %v579_v29 }
  0x44   :  { %358 = vmatmul.mubr.f32.vlgmr.msra.gmra.mrb[2].mxu0 %v379_v52 }
  0xf7   :  { %v412_v30 = vpop.f32.mrb[0].mxu0 }
  0xf8   :  { %v413_v32 = vpop.f32.mrb[1].mxu0 }
  0xf9   :  { %v447_v33 = vpop.f32.mrb[0].mxu1  ;;  %v414_v34 = vadd.f32 %v413_v32, %v412_v30 }
  0xfa   :  { %v448_v35 = vpop.f32.mrb[1].mxu1 }
  0xfb   :  { %v449_v36 = vadd.f32 %v448_v35, %v447_v33  ;;  %v220_v37 = vadd.f32 %v414_v34, %v378_v31 }
  0xfd   :  { %v290_v38 = vadd.f32 %v449_v36, %v220_v37 }
 0x117   :  { %v482_v39 = vpop.f32.mrb[2].mxu0 }
 0x118   :  { %v483_v40 = vpop.f32.mrb[3].mxu0 }
 0x119   :  { %v484_v41 = vadd.f32 %v483_v40, %v482_v39 }
 0x11b   :  { %v360_v42 = vadd.f32 %v484_v41, %v290_v38 }
 0x11d   :  { %363 = vst [vmem:[#allocation2] sm:$0x3] %v360_v42 }
 0x11e   :  { %595 = shalt.err (!%p592_p4)
}
 0x11f   :  { %s596_s22 = scalar_lea.hbm %s942_s3, 32 }
 0x120   :  { %p597_p5 = scmp.ne.s32.totalorder %s942_s3, %s596_s22  ;;  %p600_p6 = scmp.lt.u32.totalorder %s596_s22, %s942_s3 }
 0x122   :  { %p602_p7 = pnand %p600_p6, %p597_p5 }
 0x124   :  { %605 = shalt.err (!%p602_p7)
}
 0x125   :  { %373 = dma.vmem_to_hbm [thread:$0]  %s371_s19, 32, %s942_s3, [#allocation3]  }
 0x126   :  { %606 = dma.done.wait [#allocation3], 32  }
 0x127   :  { %607 = vsyncadd [#allocation3], 4294967264 }
 0x128   :  { %377 = vsyncpa [#allocation3], 1 }

</bundles_post_ra>
